<compile_context>
chip_gen: v7x
topology: tpu7x:2x2x1
jax: 0.10.0
libtpu: 0.0.40
codegen_flags: <defaults>
</compile_context>

<pallas_src>
import functools

import jax
import jax.numpy as jnp
import numpy as np
from jax.experimental import pallas as pl
from jax.experimental.pallas import tpu as pltpu


def _make_laplacian_kernel2d(kernel_size: int, normalized: bool) -> np.ndarray:
    k = np.ones((kernel_size, kernel_size), dtype=np.float64)
    mid = kernel_size // 2
    k[mid, mid] = 1.0 - float(kernel_size * kernel_size)
    if normalized:
        k = k / np.abs(k).sum()
    return k.astype(np.float32)


_PAD_MODE = {
    "reflect": "reflect",    # torch 'reflect'   == np/jnp 'reflect' (edge excluded)
    "replicate": "edge",     # torch 'replicate' == 'edge'
    "constant": "constant",  # zero padding
    "circular": "wrap",      # torch 'circular'  == 'wrap'
}


def _laplacian_block_kernel(x_ref, out_ref, pad_ref, *,
                            H, W, K, p, w_off, w_delta, border):
    # x_ref  : (TN, H, W)              block of unpadded image planes
    # out_ref: (TN, H, W)
    # pad_ref: (TN, H+2p, W+2p) f32    VMEM scratch: halo-padded block
    xw = x_ref[...].astype(jnp.float32)          # cast once per tile

    if border == "constant":
        pad_ref[...] = jnp.zeros_like(pad_ref)   # zero halo; interior overwritten

    # ---- build the padded block in VMEM (axis-by-axis, matches np.pad) ----
    pad_ref[:, p:p + H, p:p + W] = xw

    # pad rows (H axis), interior columns only
    for t in range(p):
        if border == "reflect":
            top_src, bot_src = p - t, H - 2 - t
        elif border == "replicate":
            top_src, bot_src = 0, H - 1
        elif border == "circular":
            top_src, bot_src = H - p + t, t
        else:  # constant: halo already zero
            top_src = bot_src = None
        if top_src is not None:
            pad_ref[:, t:t + 1, p:p + W] = xw[:, top_src:top_src + 1, :]
            pad_ref[:, p + H + t:p + H + t + 1, p:p + W] = (
                xw[:, bot_src:bot_src + 1, :])

    # pad columns (W axis), full padded height (corners come from padded rows)
    for t in range(p):
        if border == "reflect":
            l_src, r_src = 2 * p - t, p + W - 2 - t
        elif border == "replicate":
            l_src, r_src = p, p + W - 1
        elif border == "circular":
            l_src, r_src = W + t, p + t
        else:
            l_src = r_src = None
        if l_src is not None:
            pad_ref[:, :, t:t + 1] = pad_ref[:, :, l_src:l_src + 1]
            pad_ref[:, :, p + W + t:p + W + t + 1] = (
                pad_ref[:, :, r_src:r_src + 1])

    # ---- separable KxK box sum: K sublane-shifted adds, then K lane shifts ----
    rs = pad_ref[:, 0:H, :]
    for i in range(1, K):
        rs = rs + pad_ref[:, i:i + H, :]
    bs = rs[:, :, 0:W]
    for j in range(1, K):
        bs = bs + rs[:, :, j:j + W]

    # all off-center taps share weight w_off; fix the center tap with w_delta
    out_ref[...] = (w_off * bs + w_delta * xw).astype(out_ref.dtype)


def _pick_block_planes(n_planes: int, plane_bytes: int) -> int:
    """Largest divisor of n_planes whose block stays around a few MiB."""
    target_bytes = 2 << 20
    cap = max(1, target_bytes // max(1, plane_bytes))
    if n_planes > 1:
        cap = min(cap, (n_planes + 1) // 2)   # keep >=2 grid steps (megacore)
    cap = min(cap, n_planes)
    for d in range(cap, 0, -1):
        if n_planes % d == 0:
            return d
    return 1


def laplacian_pallas(x: jnp.ndarray,
                     kernel_size: int,
                     border_type: str = "reflect",
                     normalized: bool = True) -> jnp.ndarray:
    """Pallas implementation of kornia's Laplacian forward pass. x: (B, C, H, W)."""
    B, C, H, W = x.shape
    K = int(kernel_size)
    if K < 3 or K % 2 == 0:
        raise ValueError("kernel_size must be an odd integer >= 3")
    if border_type not in _PAD_MODE:
        raise ValueError(f"unsupported border_type: {border_type}")
    p = K // 2
    if border_type == "reflect" and (H <= p or W <= p):
        raise ValueError("reflect padding requires H > k//2 and W > k//2")
    if border_type == "circular" and (H < p or W < p):
        raise ValueError("circular padding requires H >= k//2 and W >= k//2")

    w = _make_laplacian_kernel2d(K, normalized)
    w_center = float(w[p, p])
    w_off = float(w[0, 0])
    w_delta = w_center - w_off

    N = B * C
    itemsize = jnp.dtype(x.dtype).itemsize
    TN = _pick_block_planes(N, H * W * itemsize)
    Hp, Wp = H + 2 * p, W + 2 * p

    x_flat = x.reshape(N, H, W)

    kernel_fn = functools.partial(
        _laplacian_block_kernel,
        H=H, W=W, K=K, p=p, w_off=w_off, w_delta=w_delta, border=border_type)

    # VMEM budget: double-buffered in/out blocks + padded f32 scratch + headroom.
    # Capped at 64 MiB so the request is valid on v7x as well as v5e/v6e.
    block_bytes = TN * H * W * itemsize
    scratch_bytes = TN * Hp * Wp * 4
    vmem_limit = int(min(64 << 20,
                         max(32 << 20,
                             2 * 2 * block_bytes + scratch_bytes + (8 << 20))))

    # TODO(synk): add spatial (H) halo tiling so one (TN, H, W) block never
    # exceeds v7x's 64 MiB VMEM for very large planes.
    out_flat = pl.pallas_call(
        kernel_fn,
        out_shape=jax.ShapeDtypeStruct((N, H, W), x.dtype),
        grid_spec=pltpu.PrefetchScalarGridSpec(
            num_scalar_prefetch=0,
            grid=(N // TN,),
            in_specs=[pl.BlockSpec((TN, H, W), lambda n: (n, 0, 0))],
            out_specs=pl.BlockSpec((TN, H, W), lambda n: (n, 0, 0)),
            scratch_shapes=[pltpu.VMEM((TN, Hp, Wp), jnp.float32)],
        ),
        compiler_params=pltpu.CompilerParams(
            dimension_semantics=("parallel",),
            vmem_limit_bytes=vmem_limit),
    )(x_flat)

    return out_flat.reshape(B, C, H, W)


class Laplacian:
    """Mirror of the PyTorch module API (no learned parameters)."""

    def __init__(self, kernel_size: int, border_type: str = "reflect",
                 normalized: bool = True) -> None:
        self.kernel_size = kernel_size
        self.border_type = border_type
        self.normalized = normalized

    def __call__(self, x: jnp.ndarray) -> jnp.ndarray:
        return laplacian_pallas(x, self.kernel_size, self.border_type,
                                self.normalized)


def _reference_laplacian(x: np.ndarray, kernel_size: int,
                         border_type: str, normalized: bool) -> np.ndarray:
    """Pure-numpy reference (same semantics as kornia filter2D)."""
    B, C, H, W = x.shape
    K = kernel_size
    p = K // 2
    w = _make_laplacian_kernel2d(K, normalized)
    xpad = np.pad(x.astype(np.float32), ((0, 0), (0, 0), (p, p), (p, p)),
                  mode=_PAD_MODE[border_type])
    out = np.zeros((B, C, H, W), dtype=np.float32)
    for i in range(K):
        for j in range(K):
            out += w[i, j] * xpad[:, :, i:i + H, j:j + W]
    return out.astype(x.dtype)


if __name__ == "__main__":
    key = jax.random.PRNGKey(0)
    B, C, H, W = 2, 4, 16, 16
    x = jax.random.uniform(key, (B, C, H, W), dtype=jnp.float32)

    laplace = Laplacian(kernel_size=3, border_type="reflect", normalized=True)
    out = jax.block_until_ready(laplace(x))

    assert out.shape == (B, C, H, W), out.shape
    ref = _reference_laplacian(np.asarray(x), 3, "reflect", True)
    np.testing.assert_allclose(np.asarray(out), ref, rtol=1e-5, atol=1e-5)

    print("KERNEL_OK")
</pallas_src>

<mosaic_0001>
module attributes {stable_mosaic.version = 11 : i64} {
  func.func @_laplacian_block_kernel(%arg0: i32, %arg1: memref<4x16x16xf32, #tpu.memory_space<vmem>>, %arg2: memref<4x16x16xf32, #tpu.memory_space<vmem>>, %arg3: memref<4x18x18xf32, #tpu.memory_space<vmem>>) attributes {dimension_semantics = [#tpu.dimension_semantics<parallel>], iteration_bounds = array<i64: 2>, scalar_prefetch = 0 : i64, scratch_operands = 1 : i64, tpu.core_type = #tpu.core_type<tc>, window_params = [{transform_indices = @transform_0, window_bounds = array<i64: 4, 16, 16>}, {transform_indices = @transform_1, window_bounds = array<i64: 4, 16, 16>}]} {
    %c0 = arith.constant 0 : index
    %c0_0 = arith.constant 0 : index
    %c0_1 = arith.constant 0 : index
    %0 = vector.load %arg1[%c0, %c0_0, %c0_1] : memref<4x16x16xf32, #tpu.memory_space<vmem>>, vector<4x16x16xf32>
    %c0_2 = arith.constant 0 : index
    %c1 = arith.constant 1 : index
    %c1_3 = arith.constant 1 : index
    %1 = vector.load %arg3[%c0_2, %c1, %c1_3] : memref<4x18x18xf32, #tpu.memory_space<vmem>>, vector<4x16x16xf32>
    tpu.vector_store %arg3[%c0_2, %c1, %c1_3], %0 {strides = array<i32>} : memref<4x18x18xf32, #tpu.memory_space<vmem>>, vector<4x16x16xf32>,
    %2 = vector.extract_strided_slice %0 {offsets = [0, 1, 0], sizes = [4, 1, 16], strides = [1, 1, 1]} : vector<4x16x16xf32> to vector<4x1x16xf32>
    %c0_4 = arith.constant 0 : index
    %c0_5 = arith.constant 0 : index
    %c1_6 = arith.constant 1 : index
    %3 = vector.load %arg3[%c0_4, %c0_5, %c1_6] : memref<4x18x18xf32, #tpu.memory_space<vmem>>, vector<4x1x16xf32>
    tpu.vector_store %arg3[%c0_4, %c0_5, %c1_6], %2 {strides = array<i32>} : memref<4x18x18xf32, #tpu.memory_space<vmem>>, vector<4x1x16xf32>,
    %4 = vector.extract_strided_slice %0 {offsets = [0, 14, 0], sizes = [4, 1, 16], strides = [1, 1, 1]} : vector<4x16x16xf32> to vector<4x1x16xf32>
    %c0_7 = arith.constant 0 : index
    %c17 = arith.constant 17 : index
    %c1_8 = arith.constant 1 : index
    %5 = vector.load %arg3[%c0_7, %c17, %c1_8] : memref<4x18x18xf32, #tpu.memory_space<vmem>>, vector<4x1x16xf32>
    tpu.vector_store %arg3[%c0_7, %c17, %c1_8], %4 {strides = array<i32>} : memref<4x18x18xf32, #tpu.memory_space<vmem>>, vector<4x1x16xf32>,
    %c0_9 = arith.constant 0 : index
    %c0_10 = arith.constant 0 : index
    %c2 = arith.constant 2 : index
    %6 = vector.load %arg3[%c0_9, %c0_10, %c2] : memref<4x18x18xf32, #tpu.memory_space<vmem>>, vector<4x18x1xf32>
    %c0_11 = arith.constant 0 : index
    %c0_12 = arith.constant 0 : index
    %c0_13 = arith.constant 0 : index
    %7 = vector.load %arg3[%c0_11, %c0_12, %c0_13] : memref<4x18x18xf32, #tpu.memory_space<vmem>>, vector<4x18x1xf32>
    tpu.vector_store %arg3[%c0_11, %c0_12, %c0_13], %6 {strides = array<i32>} : memref<4x18x18xf32, #tpu.memory_space<vmem>>, vector<4x18x1xf32>,
    %c0_14 = arith.constant 0 : index
    %c0_15 = arith.constant 0 : index
    %c15 = arith.constant 15 : index
    %8 = vector.load %arg3[%c0_14, %c0_15, %c15] : memref<4x18x18xf32, #tpu.memory_space<vmem>>, vector<4x18x1xf32>
    %c0_16 = arith.constant 0 : index
    %c0_17 = arith.constant 0 : index
    %c17_18 = arith.constant 17 : index
    %9 = vector.load %arg3[%c0_16, %c0_17, %c17_18] : memref<4x18x18xf32, #tpu.memory_space<vmem>>, vector<4x18x1xf32>
    tpu.vector_store %arg3[%c0_16, %c0_17, %c17_18], %8 {strides = array<i32>} : memref<4x18x18xf32, #tpu.memory_space<vmem>>, vector<4x18x1xf32>,
    %c0_19 = arith.constant 0 : index
    %c0_20 = arith.constant 0 : index
    %c0_21 = arith.constant 0 : index
    %10 = vector.load %arg3[%c0_19, %c0_20, %c0_21] : memref<4x18x18xf32, #tpu.memory_space<vmem>>, vector<4x16x18xf32>
    %c0_22 = arith.constant 0 : index
    %c1_23 = arith.constant 1 : index
    %c0_24 = arith.constant 0 : index
    %11 = vector.load %arg3[%c0_22, %c1_23, %c0_24] : memref<4x18x18xf32, #tpu.memory_space<vmem>>, vector<4x16x18xf32>
    %12 = arith.addf %10, %11 : vector<4x16x18xf32>
    %c0_25 = arith.constant 0 : index
    %c2_26 = arith.constant 2 : index
    %c0_27 = arith.constant 0 : index
    %13 = vector.load %arg3[%c0_25, %c2_26, %c0_27] : memref<4x18x18xf32, #tpu.memory_space<vmem>>, vector<4x16x18xf32>
    %14 = arith.addf %12, %13 : vector<4x16x18xf32>
    %15 = vector.extract_strided_slice %14 {offsets = [0, 0, 0], sizes = [4, 16, 16], strides = [1, 1, 1]} : vector<4x16x18xf32> to vector<4x16x16xf32>
    %16 = vector.extract_strided_slice %14 {offsets = [0, 0, 1], sizes = [4, 16, 16], strides = [1, 1, 1]} : vector<4x16x18xf32> to vector<4x16x16xf32>
    %17 = arith.addf %15, %16 : vector<4x16x16xf32>
    %18 = vector.extract_strided_slice %14 {offsets = [0, 0, 2], sizes = [4, 16, 16], strides = [1, 1, 1]} : vector<4x16x18xf32> to vector<4x16x16xf32>
    %19 = arith.addf %17, %18 : vector<4x16x16xf32>
    %cst = arith.constant 6.250000e-02 : f32
    %20 = vector.broadcast %cst : f32 to vector<4x16x16xf32>
    %21 = arith.mulf %20, %19 : vector<4x16x16xf32>
    %cst_28 = arith.constant -5.625000e-01 : f32
    %22 = vector.broadcast %cst_28 : f32 to vector<4x16x16xf32>
    %23 = arith.mulf %22, %0 : vector<4x16x16xf32>
    %24 = arith.addf %21, %23 : vector<4x16x16xf32>
    %c0_29 = arith.constant 0 : index
    %c0_30 = arith.constant 0 : index
    %c0_31 = arith.constant 0 : index
    %25 = vector.load %arg2[%c0_29, %c0_30, %c0_31] : memref<4x16x16xf32, #tpu.memory_space<vmem>>, vector<4x16x16xf32>
    tpu.vector_store %arg2[%c0_29, %c0_30, %c0_31], %24 {strides = array<i32>} : memref<4x16x16xf32, #tpu.memory_space<vmem>>, vector<4x16x16xf32>,
    return
  }
  func.func @transform_0(%arg0: i32) -> (i32, i32, i32) {
    %c0_i32 = arith.constant 0 : i32
    %c0_i32_0 = arith.constant 0 : i32
    %c0_i32_1 = arith.constant 0 : i32
    return %arg0, %c0_i32, %c0_i32_0 : i32, i32, i32
  }
  func.func @transform_1(%arg0: i32) -> (i32, i32, i32) {
    %c0_i32 = arith.constant 0 : i32
    %c0_i32_0 = arith.constant 0 : i32
    %c0_i32_1 = arith.constant 0 : i32
    return %arg0, %c0_i32, %c0_i32_0 : i32, i32, i32
  }
}

</mosaic_0001>

<bundles_post_ra>
// kernel: tpu_custom_call.1
= control target key start
LH: loop header
LB: loop body
LE: loop exit
PB: predicated region body
PF: predicated region fallthrough
CT: control target
= control target key end

     0   :  { %6 = vsyncpa [#allocation4], 0  ;;  %s1077_s0 = inlined_call_operand.hbm [shape: f32[8,16,16], index: 0, kind: input, shape index: {}]   ;;  %s1078_s1 = inlined_call_operand.hbm [shape: f32[8,16,16], index: 1, kind: output, shape index: {}]  }
   0x1   :  { %8 = vsyncpa [#allocation4 + $0x1], 0 }
   0x2   :  { %9 = vsyncpa [#allocation5], 0 }
   0x3   :  { %11 = vsyncpa [#allocation5 + $0x1], 0  ;;  %s770_s6 = smov 0   ;;  %s772_s7 = smov 0  }
   0x4   :  { %s774_s8 = smov 0   ;;  %s776_s9 = smov 0  }
   0x5 LB: > { %s791_s10 = sadd.s32 4294967295, %s748_s9   ;;  %s578_s11 = sadd.s32 4294967294, %s748_s9   ;;  %s748_s9 = sphi %s776_s9, %s1091_s9   ;;  %s744_s8 = sphi %s774_s8, %s1090_s8   ;;  %s740_s7 = sphi %s772_s7, %s1089_s7   ;;  %s736_s6 = sphi %s770_s6, %s1088_s6  }
   0x6   : > { %s795_s12 = sadd.s32 1, %s748_s9   ;;  %s24_s13 = sadd.s32 1, %s744_s8 }
   0x7   : > { %s21_s14 = ssub.s32 %s748_s9, %s795_s12  ;;  %p31_p0 = scmp.ne.s32.totalorder %s744_s8, %s740_s7 }
   0x8   : > { %p22_p1 = scmp.eq.s32.totalorder %s21_s14, 0  ;;  %p32_p2 = scmp.eq.s32.totalorder %s748_s9, 0 }
   0x9   : > { %p37_p3 = scmp.ne.s32.totalorder %s740_s7, %s736_s6  ;;  %p38_p4 = scmp.eq.s32.totalorder %s791_s10, 0 }
   0xa   : > { %s807_s15 = scalar_select %p22_p1, %s744_s8, %s24_s13  }
   0xb   : > { %p809_p5 = por %p32_p2, %p31_p0  ;;  %p813_p6 = por %p38_p4, %p37_p3 }
   0xc   : > { %p61_p7 = scmp.eq.s32.totalorder %s791_s10, 1  ;;  %p67_p8 = scmp.eq.s32.totalorder %s578_s11, 1 }
   0xd   : > { %p610_p10 = scmp.lt.s32.totalorder %s748_s9, 2  ;;  %s87_s20 = sand.u32 1, %s744_s8  }
   0xe   : > { %p820_p11 = por %p61_p7, %p31_p0  ;;  %p824_p12 = por %p67_p8, %p37_p3 }
   0xf   : > { %s595_s21 = sshll.u32 %s748_s9, 10  ;;  %s581_s22 = sshll.u32 %s87_s20, 6 }
  0x10   : > { %s1082_s18 = scalar_select %p820_p11, 1, 0 }
  0x11   : > { %s1083_s19 = scalar_select %p824_p12, 1, 0 }
  0x12   : > { %s833_s25 = scalar_lea.hbm %s1077_s0, %s595_s21  ;;  %s91_s26 = scalar_lea.vmem [#allocation3], %s581_s22 }
  0x13   : > { %s99_s27 = sshll.u32 %s91_s26, 4  ;;  %p837_p13 = pnand %p610_p10, %p809_p5  ;;  %s841_s27 = int_to_ptr.vmem [resolvable:$true] %s99_s27 }
  0x14   : > { %s843_s29 = scalar_lea.sflag [#allocation4], %s87_s20  ;;  %s652_s30 = scalar_lea.hbm %s833_s25, 1024 }
  0x15   : > { %p653_p0 = scmp.ne.s32.totalorder %s833_s25, %s652_s30  ;;  %p654_p1 = pneg %p837_p13 }
  0x16   : > { %s657_s4 = scalar_lea.hbm %s1077_s0, 2048  ;;  %p658_p4 = scmp.lt.u32.totalorder %s833_s25, %s1077_s0 }
  0x17   : > { %p655_p2 = pnand %p654_p1, %p653_p0  ;;  %p659_p5 = scmp.lt.u32.totalorder %s657_s4, %s652_s30 }
  0x18   : > { %p661_p8 = scmp.lt.u32.totalorder %s652_s30, %s833_s25 }
  0x19   : > { %p656_p3 = pneg %p655_p2  ;;  %p660_p7 = por %p659_p5, %p658_p4 }
  0x1b   : > { %p662_p10 = por %p661_p8, %p660_p7 }
  0x1d   : > { %p663_p9 = pnand %p662_p10, %p656_p3 }
  0x1f   : > { %666 = shalt.err (!%p663_p9)
}
  0x20   : > { %s667_s13 = scalar_lea.vmem %s841_s27, 1024  ;;  %s750_s14 = smov [#allocation3]  }
  0x21   : > { %p668_p0 = scmp.ne.s32.totalorder %s841_s27, %s667_s13  ;;  %s672_s16 = sshll.u32 %s750_s14, 4  ;;  %s673_s16 = int_to_ptr.vmem [resolvable:$false] %s672_s16 }
  0x22   : > { %s674_s20 = scalar_lea.vmem %s673_s16, 2048  ;;  %p675_p11 = scmp.lt.s32.totalorder %s841_s27, %s673_s16 }
  0x23   : > { %p670_p2 = pnand %p668_p0, %p654_p1  ;;  %p676_p4 = scmp.lt.s32.totalorder %s674_s20, %s667_s13 }
  0x25   : > { %p671_p12 = pneg %p670_p2  ;;  %p677_p5 = por %p676_p4, %p675_p11 }
  0x27   : > { %p678_p7 = pnand %p677_p5, %p671_p12 }
  0x29   : > { %681 = shalt.err (!%p678_p7)
}
  0x2a   : > { %s751_s21 = smov 128   ;;  %s752_s22 = smov 8  }
  0x2b   : > { %605 = dma.hbm_to_vmem [thread:$0]  (!%p837_p13), %s833_s25, 1024, %s841_s27, %s843_s29, %s751_s21, %s751_s21, %s752_s22  }
  0x2c   : > { %p585_p9 = scmp.ge.s32.totalorder %s748_s9, 1  ;;  %p107_p1 = scmp.lt.s32.totalorder %s748_s9, 3 }
  0x2e   : > { %p108_p3 = pnand %p585_p9, %p107_p1 }
  0x2f   : > { %s874_s23 = sand.u32 (!%p108_p3), 1, %s740_s7  }
  0x30   : > { %111 = sbr.rel (%p108_p3) target bundleno = 606 (0x25e), region = 24  ;;  %s586_s24 = sshll.u32 (!%p108_p3), %s874_s23, 6 }
  0x31   : > { %s114_s26 = scalar_lea.sflag (!%p108_p3), [#allocation4], %s874_s23  ;;  %s117_s30 = scalar_lea.vmem (!%p108_p3), [#allocation3], %s586_s24 }
  0x37   : > { %727 = dma.done.wait (%p813_p6), %s114_s26, 1024  }
  0x38   : > { %729 = vsyncadd (%p813_p6), %s114_s26, 4294966272  ;;  %v884_v0 = vld [vmem:[%s117_s30] sm:$0xff]  ;;  %v886_v1 = vld [vmem:[%s117_s30 + $0x10] sm:$0xff]  ;;  %s753_s25 = smov 1   ;;  %vm178_vm0 = vcmask 138248   ;;  %vm187_vm1 = vcmask 132105  }
  0x39   : > { %154 = vrot.lane.b32.xlu0 %v884_v0, %s753_s25  ;;  %158 = vrot.lane.b32.xlu1 %v886_v1, %s753_s25  ;;  %v890_v2 = vld [vmem:[%s117_s30 + $0x8] sm:$0xff]  ;;  %v892_v3 = vld [vmem:[%s117_s30 + $0x18] sm:$0xff]  ;;  %vm192_vm2 = vcmask 137230   ;;  %s754_s17 = smov 126   ;;  %vm257_vm3 = vcmask 7168   ;;  %vm260_vm4 = vcmask 1024  }
  0x3a   : > { %v896_v4 = vld [vmem:[%s117_s30 + $0x20] sm:$0xff]  ;;  %v898_v5 = vld [vmem:[%s117_s30 + $0x28] sm:$0xff]  ;;  %v902_v6 = vld [vmem:[%s117_s30 + $0x38] sm:$0xff]  ;;  %s755_s27 = smov 2   ;;  %vm331_vm5 = vcmask 146568   ;;  %vm334_vm6 = vcmask 140424  }
  0x3b   : > { %v904_v7 = vld [vmem:[%s117_s30 + $0x30] sm:$0xff]  ;;  %s756_s28 = smov 127   ;;  %vm481_vm7 = vcmask 130048   ;;  %s1003_s29 = scalar_lea.vmem [#allocation6], %s586_s24 }
  0x3c   : > { %s597_s2 = sshll.u32 %s791_s10, 10  ;;  %s505_s3 = sshll.u32 %s1003_s29, 4  ;;  %s1031_s3 = int_to_ptr.vmem [resolvable:$true] %s505_s3 }
  0x3d   : > { %156 = vrot.lane.b32.xlu0 %v890_v2, %s753_s25  ;;  %160 = vrot.lane.b32.xlu1 %v892_v3, %s753_s25  ;;  %s1029_s11 = scalar_lea.hbm %s1078_s1, %s597_s2  ;;  %s491_s10 = scalar_lea.sflag [#allocation5], %s874_s23 }
  0x3e   : > { %s682_s13 = scalar_lea.vmem %s1031_s3, 1024  ;;  %p1085_p11 = scmp.ne.s32.totalorder %s1082_s18, 0 }
  0x3f   : > { %p683_p6 = scmp.ne.s32.totalorder %s1031_s3, %s682_s13  ;;  %s757_s14 = smov [#allocation6]  }
  0x40   : > { %s686_s16 = sshll.u32 %s757_s14, 4  ;;  %s687_s16 = int_to_ptr.vmem [resolvable:$false] %s686_s16 }
  0x41   : > { %162 = vrot.lane.b32.xlu0 %v896_v4, %s753_s25  ;;  %164 = vrot.lane.b32.xlu1 %v898_v5, %s753_s25  ;;  %p684_p12 = pnand %p683_p6, %p1085_p11  ;;  %s688_s20 = scalar_lea.vmem %s687_s16, 2048 }
  0x42   : > { %p689_p8 = scmp.lt.s32.totalorder %s1031_s3, %s687_s16  ;;  %p690_p10 = scmp.lt.s32.totalorder %s688_s20, %s682_s13 }
  0x43   : > { %p685_p13 = pneg %p684_p12 }
  0x44   : > { %p691_p0 = por %p690_p10, %p689_p8 }
  0x45   : > { %168 = vrot.lane.b32.xlu1 %v902_v6, %s753_s25  ;;  %166 = vrot.lane.b32.xlu0 %v904_v7, %s753_s25 }
  0x46   : > { %p692_p2 = pnand %p691_p0, %p685_p13 }
  0xab   : > { %v155_v8 = vpop.permute.xlu0 %154  ;;  %v159_v9 = vpop.permute.xlu1 %158 }
  0xac   : > { %179 = vst.msk [vmem:[#allocation2 + $0x1] sm:$0xff] %vm178_vm0, %v155_v8  ;;  %181 = vst.msk [vmem:[#allocation2 + $0x19] sm:$0xff] %vm178_vm0, %v159_v9 }
  0xad   : > { %188 = vst.msk [vmem:[#allocation2 - $0x1] sm:$0x2] %vm187_vm1, %v155_v8  ;;  %189 = vst.msk [vmem:[#allocation2 + $0x17] sm:$0x2] %vm187_vm1, %v159_v9 }
  0xaf   : > { %v157_v10 = vpop.permute.xlu0 %156  ;;  %v161_v11 = vpop.permute.xlu1 %160 }
  0xb0   : > { %180 = vst.msk [vmem:[#allocation2 + $0x9] sm:$0xff] %vm178_vm0, %v157_v10  ;;  %182 = vst.msk [vmem:[#allocation2 + $0x21] sm:$0xff] %vm178_vm0, %v161_v11 }
  0xb1   : > { %193 = vst.msk [vmem:[#allocation2 + $0xb] sm:$0x40] %vm192_vm2, %v157_v10  ;;  %194 = vst.msk [vmem:[#allocation2 + $0x23] sm:$0x40] %vm192_vm2, %v161_v11 }
  0xb3   : > { %v163_v13 = vpop.permute.xlu0 %162  ;;  %v165_v14 = vpop.permute.xlu1 %164 }
  0xb4   : > { %v197_v12 = vld [vmem:[#allocation2] sm:$0xff]  ;;  %183 = vst.msk [vmem:[#allocation2 + $0x31] sm:$0xff] %vm178_vm0, %v163_v13  ;;  %184 = vst.msk [vmem:[#allocation2 + $0x39] sm:$0xff] %vm178_vm0, %v165_v14  ;;  %v200_v20 = vld [vmem:[#allocation2 + $0x18] sm:$0xff] }
  0xb5   : > { %221 = vrot.lane.b32.xlu0 %v197_v12, %s754_s17  ;;  %190 = vst.msk [vmem:[#allocation2 + $0x2f] sm:$0x2] %vm187_vm1, %v163_v13 }
  0xb6   : > { %195 = vst.msk [vmem:[#allocation2 + $0x3b] sm:$0x40] %vm192_vm2, %v165_v14 }
  0xb7   : > { %v198_v16 = vld [vmem:[#allocation2 + $0x8] sm:$0xff]  ;;  %v169_v17 = vpop.permute.xlu1 %168  ;;  %v167_v18 = vpop.permute.xlu0 %166  ;;  %v201_v19 = vld [vmem:[#allocation2 + $0x20] sm:$0xff] }
  0xb8   : > { %v199_v15 = vld [vmem:[#allocation2 + $0x10] sm:$0x3]  ;;  %223 = vrot.lane.b32.xlu1 %v198_v16, %s754_s17  ;;  %186 = vst.msk [vmem:[#allocation2 + $0x51] sm:$0xff] %vm178_vm0, %v169_v17  ;;  %185 = vst.msk [vmem:[#allocation2 + $0x49] sm:$0xff] %vm178_vm0, %v167_v18  ;;  %v202_v21 = vld [vmem:[#allocation2 + $0x28] sm:$0x3] }
  0xb9   : > { %225 = vrot.lane.b32.xlu0 %v199_v15, %s754_s17  ;;  %196 = vst.msk [vmem:[#allocation2 + $0x53] sm:$0x40] %vm192_vm2, %v169_v17 }
  0xba   : > { %191 = vst.msk [vmem:[#allocation2 + $0x47] sm:$0x2] %vm187_vm1, %v167_v18 }
  0xbb   : > { %v204_v23 = vld [vmem:[#allocation2 + $0x38] sm:$0xff] }
  0xbc   : > { %227 = vrot.lane.b32.xlu1 %v200_v20, %s754_s17  ;;  %v203_v22 = vld [vmem:[#allocation2 + $0x30] sm:$0xff] }
  0xbd   : > { %229 = vrot.lane.b32.xlu0 %v201_v19, %s754_s17  ;;  %v205_v24 = vld [vmem:[#allocation2 + $0x40] sm:$0x3] }
  0xbf   : > { %v207_v25 = vld [vmem:[#allocation2 + $0x50] sm:$0xff] }
  0xc0   : > { %231 = vrot.lane.b32.xlu1 %v202_v21, %s754_s17  ;;  %v208_v27 = vld [vmem:[#allocation2 + $0x58] sm:$0x3] }
  0xc1   : > { %233 = vrot.lane.b32.xlu0 %v203_v22, %s754_s17  ;;  %v206_v26 = vld [vmem:[#allocation2 + $0x48] sm:$0xff] }
  0xc4   : > { %235 = vrot.lane.b32.xlu1 %v204_v23, %s754_s17 }
  0xc5   : > { %237 = vrot.lane.b32.xlu0 %v205_v24, %s754_s17 }
  0xc8   : > { %239 = vrot.lane.b32.xlu1 %v206_v26, %s754_s17 }
  0xc9   : > { %241 = vrot.lane.b32.xlu0 %v207_v25, %s754_s17 }
  0xcc   : > { %243 = vrot.lane.b32.xlu1 %v208_v27, %s754_s17 }
 0x127   : > { %v222_v28 = vpop.permute.xlu0 %221 }
 0x128   : > { %258 = vst.msk [vmem:[#allocation2] sm:$0xff] %vm257_vm3, %v222_v28 }
 0x12a   : > { %v224_v29 = vpop.permute.xlu1 %223 }
 0x12b   : > { %v226_v30 = vpop.permute.xlu0 %225  ;;  %259 = vst.msk [vmem:[#allocation2 + $0x8] sm:$0xff] %vm257_vm3, %v224_v29 }
 0x12c   : > { %261 = vst.msk [vmem:[#allocation2 + $0x10] sm:$0x3] %vm260_vm4, %v226_v30 }
 0x12e   : > { %v228_v31 = vpop.permute.xlu1 %227 }
 0x12f   : > { %v230_v32 = vpop.permute.xlu0 %229  ;;  %v271_v33 = vld [vmem:[#allocation2] sm:$0xff]  ;;  %262 = vst.msk [vmem:[#allocation2 + $0x18] sm:$0xff] %vm257_vm3, %v228_v31 }
 0x130   : > { %263 = vst.msk [vmem:[#allocation2 + $0x20] sm:$0xff] %vm257_vm3, %v230_v32  ;;  %295 = vrot.lane.b32.xlu0 %v271_v33, %s755_s27 }
 0x132   : > { %v232_v34 = vpop.permute.xlu1 %231  ;;  %v272_v36 = vld [vmem:[#allocation2 + $0x8] sm:$0xff] }
 0x133   : > { %v234_v35 = vpop.permute.xlu0 %233  ;;  %v273_v37 = vld [vmem:[#allocation2 + $0x10] sm:$0x3]  ;;  %264 = vst.msk [vmem:[#allocation2 + $0x28] sm:$0x3] %vm260_vm4, %v232_v34  ;;  %297 = vrot.lane.b32.xlu1 %v272_v36, %s755_s27 }
 0x134   : > { %265 = vst.msk [vmem:[#allocation2 + $0x30] sm:$0xff] %vm257_vm3, %v234_v35  ;;  %299 = vrot.lane.b32.xlu0 %v273_v37, %s755_s27 }
 0x136   : > { %v236_v38 = vpop.permute.xlu1 %235  ;;  %v274_v40 = vld [vmem:[#allocation2 + $0x18] sm:$0xff] }
 0x137   : > { %v238_v39 = vpop.permute.xlu0 %237  ;;  %v275_v41 = vld [vmem:[#allocation2 + $0x20] sm:$0xff]  ;;  %266 = vst.msk [vmem:[#allocation2 + $0x38] sm:$0xff] %vm257_vm3, %v236_v38  ;;  %301 = vrot.lane.b32.xlu1 %v274_v40, %s755_s27 }
 0x138   : > { %267 = vst.msk [vmem:[#allocation2 + $0x40] sm:$0x3] %vm260_vm4, %v238_v39  ;;  %303 = vrot.lane.b32.xlu0 %v275_v41, %s755_s27 }
 0x13a   : > { %v240_v42 = vpop.permute.xlu1 %239  ;;  %v276_v44 = vld [vmem:[#allocation2 + $0x28] sm:$0x3] }
 0x13b   : > { %v242_v43 = vpop.permute.xlu0 %241  ;;  %v277_v45 = vld [vmem:[#allocation2 + $0x30] sm:$0xff]  ;;  %268 = vst.msk [vmem:[#allocation2 + $0x48] sm:$0xff] %vm257_vm3, %v240_v42  ;;  %305 = vrot.lane.b32.xlu1 %v276_v44, %s755_s27 }
 0x13c   : > { %269 = vst.msk [vmem:[#allocation2 + $0x50] sm:$0xff] %vm257_vm3, %v242_v43  ;;  %307 = vrot.lane.b32.xlu0 %v277_v45, %s755_s27 }
 0x13e   : > { %v244_v46 = vpop.permute.xlu1 %243  ;;  %v278_v47 = vld [vmem:[#allocation2 + $0x38] sm:$0xff] }
 0x13f   : > { %v279_v48 = vld [vmem:[#allocation2 + $0x40] sm:$0x3]  ;;  %270 = vst.msk [vmem:[#allocation2 + $0x58] sm:$0x3] %vm260_vm4, %v244_v46  ;;  %309 = vrot.lane.b32.xlu1 %v278_v47, %s755_s27 }
 0x140   : > { %311 = vrot.lane.b32.xlu0 %v279_v48, %s755_s27 }
 0x142   : > { %v280_v49 = vld [vmem:[#allocation2 + $0x48] sm:$0xff] }
 0x143   : > { %v281_v50 = vld [vmem:[#allocation2 + $0x50] sm:$0xff]  ;;  %313 = vrot.lane.b32.xlu1 %v280_v49, %s755_s27 }
 0x144   : > { %315 = vrot.lane.b32.xlu0 %v281_v50, %s755_s27 }
 0x146   : > { %v282_v51 = vld [vmem:[#allocation2 + $0x58] sm:$0x3] }
 0x147   : > { %317 = vrot.lane.b32.xlu1 %v282_v51, %s755_s27 }
 0x1a2   : > { %v296_v52 = vpop.permute.xlu0 %295 }
 0x1a3   : > { %332 = vst.msk [vmem:[#allocation2] sm:$0xff] %vm331_vm5, %v296_v52 }
 0x1a5   : > { %v298_v53 = vpop.permute.xlu1 %297 }
 0x1a6   : > { %v300_v54 = vpop.permute.xlu0 %299  ;;  %333 = vst.msk [vmem:[#allocation2 + $0x8] sm:$0xff] %vm331_vm5, %v298_v53 }
 0x1a7   : > { %335 = vst.msk [vmem:[#allocation2 + $0x10] sm:$0x3] %vm334_vm6, %v300_v54 }
 0x1a9   : > { %v302_v55 = vpop.permute.xlu1 %301 }
 0x1aa   : > { %v304_v56 = vpop.permute.xlu0 %303  ;;  %336 = vst.msk [vmem:[#allocation2 + $0x18] sm:$0xff] %vm331_vm5, %v302_v55  ;;  %v345_v59 = vld [vmem:[#allocation2] sm:$0xff] }
 0x1ab   : > { %337 = vst.msk [vmem:[#allocation2 + $0x20] sm:$0xff] %vm331_vm5, %v304_v56 }
 0x1ad   : > { %v306_v57 = vpop.permute.xlu1 %305  ;;  %v353_v60 = vld [vmem:[#allocation2 + $0x1] sm:$0xff] }
 0x1ae   : > { %v308_v58 = vpop.permute.xlu0 %307  ;;  %v346_v61 = vld [vmem:[#allocation2 + $0x8] sm:$0xff]  ;;  %338 = vst.msk [vmem:[#allocation2 + $0x28] sm:$0x3] %vm334_vm6, %v306_v57  ;;  %v361_v62 = vadd.f32 %v353_v60, %v345_v59 }
 0x1af   : > { %339 = vst.msk [vmem:[#allocation2 + $0x30] sm:$0xff] %vm331_vm5, %v308_v58  ;;  %v354_v63 = vld [vmem:[#allocation2 + $0x9] sm:$0xff]  ;;  %v465_v58 = vmul.f32 -0.5625, %v884_v0 }
 0x1b0   : > { %v369_v8 = vld [vmem:[#allocation2 + $0x2] sm:$0xff]  ;;  %v362_v9 = vadd.f32 %v354_v63, %v346_v61  ;;  %v370_v11 = vld [vmem:[#allocation2 + $0xa] sm:$0xff]  ;;  %v467_v63 = vmul.f32 -0.5625, %v886_v1 }
 0x1b1   : > { %v967_v10 = vadd.f32 %v369_v8, %v361_v62  ;;  %v310_v12 = vpop.permute.xlu1 %309  ;;  %v347_v15 = vld [vmem:[#allocation2 + $0x18] sm:$0xff] }
 0x1b2   : > { %v312_v13 = vpop.permute.xlu0 %311  ;;  %v969_v14 = vadd.f32 %v370_v11, %v362_v9  ;;  %v355_v16 = vld [vmem:[#allocation2 + $0x19] sm:$0xff]  ;;  %340 = vst.msk [vmem:[#allocation2 + $0x38] sm:$0xff] %vm331_vm5, %v310_v12  ;;  %v466_v11 = vmul.f32 -0.5625, %v890_v2 }
 0x1b3   : > { %341 = vst.msk [vmem:[#allocation2 + $0x40] sm:$0x3] %vm334_vm6, %v312_v13  ;;  %393 = vrot.lane.b32.xlu0 %v967_v10, %s756_s28  ;;  %v363_v17 = vadd.f32 %v355_v16, %v347_v15  ;;  %v371_v18 = vld [vmem:[#allocation2 + $0x1a] sm:$0xff] }
 0x1b4   : > { %395 = vrot.lane.b32.xlu1 %v969_v14, %s756_s28  ;;  %v348_v22 = vld [vmem:[#allocation2 + $0x20] sm:$0xff] }
 0x1b5   : > { %v379_v19 = vadd.f32 %v371_v18, %v363_v17  ;;  %v314_v20 = vpop.permute.xlu1 %313  ;;  %v356_v23 = vld [vmem:[#allocation2 + $0x21] sm:$0xff]  ;;  %v469_v17 = vmul.f32 -0.5625, %v896_v4  ;;  %v471_v4 = vmul.f32 -0.5625, %v904_v7 }
 0x1b6   : > { %v316_v21 = vpop.permute.xlu0 %315  ;;  %342 = vst.msk [vmem:[#allocation2 + $0x48] sm:$0xff] %vm331_vm5, %v314_v20  ;;  %v364_v24 = vadd.f32 %v356_v23, %v348_v22  ;;  %v372_v25 = vld [vmem:[#allocation2 + $0x22] sm:$0xff]  ;;  %v349_v26 = vld [vmem:[#allocation2 + $0x30] sm:$0xff] }
 0x1b7   : > { %343 = vst.msk [vmem:[#allocation2 + $0x50] sm:$0xff] %vm331_vm5, %v316_v21  ;;  %397 = vrot.lane.b32.xlu0 %v379_v19, %s756_s28 }
 0x1b8   : > { %v380_v27 = vadd.f32 %v372_v25, %v364_v24 }
 0x1b9   : > { %v318_v28 = vpop.permute.xlu1 %317  ;;  %v357_v29 = vld [vmem:[#allocation2 + $0x31] sm:$0xff] }
 0x1ba   : > { %v350_v30 = vld [vmem:[#allocation2 + $0x38] sm:$0xff]  ;;  %344 = vst.msk [vmem:[#allocation2 + $0x58] sm:$0x3] %vm334_vm6, %v318_v28  ;;  %399 = vrot.lane.b32.xlu1 %v380_v27, %s756_s28  ;;  %v365_v31 = vadd.f32 %v357_v29, %v349_v26 }
 0x1bb   : > { %v358_v32 = vld [vmem:[#allocation2 + $0x39] sm:$0xff] }
 0x1bc   : > { %v373_v33 = vld [vmem:[#allocation2 + $0x32] sm:$0xff]  ;;  %v366_v34 = vadd.f32 %v358_v32, %v350_v30  ;;  %v374_v36 = vld [vmem:[#allocation2 + $0x3a] sm:$0xff] }
 0x1bd   : > { %v381_v35 = vadd.f32 %v373_v33, %v365_v31  ;;  %v351_v38 = vld [vmem:[#allocation2 + $0x48] sm:$0xff] }
 0x1be   : > { %v382_v37 = vadd.f32 %v374_v36, %v366_v34  ;;  %v359_v39 = vld [vmem:[#allocation2 + $0x49] sm:$0xff] }
 0x1bf   : > { %401 = vrot.lane.b32.xlu0 %v381_v35, %s756_s28  ;;  %v367_v40 = vadd.f32 %v359_v39, %v351_v38  ;;  %v375_v41 = vld [vmem:[#allocation2 + $0x4a] sm:$0xff] }
 0x1c0   : > { %403 = vrot.lane.b32.xlu1 %v382_v37, %s756_s28  ;;  %v352_v43 = vld [vmem:[#allocation2 + $0x50] sm:$0xff] }
 0x1c1   : > { %v383_v42 = vadd.f32 %v375_v41, %v367_v40  ;;  %v360_v44 = vld [vmem:[#allocation2 + $0x51] sm:$0xff] }
 0x1c2   : > { %v368_v45 = vadd.f32 %v360_v44, %v352_v43  ;;  %v376_v46 = vld [vmem:[#allocation2 + $0x52] sm:$0xff] }
 0x1c3   : > { %405 = vrot.lane.b32.xlu0 %v383_v42, %s756_s28 }
 0x1c4   : > { %v384_v47 = vadd.f32 %v376_v46, %v368_v45 }
 0x1c6   : > { %407 = vrot.lane.b32.xlu1 %v384_v47, %s756_s28 }
 0x1c7   : > { %425 = vrot.lane.b32.xlu0 %v967_v10, %s754_s17 }
 0x1ca   : > { %427 = vrot.lane.b32.xlu1 %v969_v14, %s754_s17 }
 0x1cb   : > { %429 = vrot.lane.b32.xlu0 %v379_v19, %s754_s17 }
 0x1ce   : > { %431 = vrot.lane.b32.xlu1 %v380_v27, %s754_s17 }
 0x1cf   : > { %433 = vrot.lane.b32.xlu0 %v381_v35, %s754_s17 }
 0x1d2   : > { %435 = vrot.lane.b32.xlu1 %v382_v37, %s754_s17 }
 0x1d3   : > { %437 = vrot.lane.b32.xlu0 %v383_v42, %s754_s17 }
 0x1d6   : > { %439 = vrot.lane.b32.xlu1 %v384_v47, %s754_s17 }
 0x225   : > { %v394_v48 = vpop.permute.xlu0 %393 }
 0x226   : > { %v396_v49 = vpop.permute.xlu1 %395  ;;  %v417_v55 = vadd.f32 %v394_v48, %v967_v10 }
 0x227   : > { %v418_v60 = vadd.f32 %v396_v49, %v969_v14  ;;  %v468_v14 = vmul.f32 -0.5625, %v892_v3  ;;  %v470_v3 = vmul.f32 -0.5625, %v898_v5 }
 0x229   : > { %v398_v50 = vpop.permute.xlu0 %397 }
 0x22a   : > { %v419_v61 = vadd.f32 %v398_v50, %v379_v19 }
 0x22c   : > { %v400_v51 = vpop.permute.xlu1 %399 }
 0x22d   : > { %v420_v15 = vadd.f32 %v400_v51, %v380_v27 }
 0x231   : > { %v402_v52 = vpop.permute.xlu0 %401 }
 0x232   : > { %v404_v53 = vpop.permute.xlu1 %403  ;;  %v421_v16 = vadd.f32 %v402_v52, %v381_v35  ;;  %v472_v35 = vmul.f32 -0.5625, %v902_v6 }
 0x233   : > { %v422_v23 = vadd.f32 %v404_v53, %v382_v37 }
 0x235   : > { %v406_v54 = vpop.permute.xlu0 %405 }
 0x236   : > { %v423_v24 = vadd.f32 %v406_v54, %v383_v42 }
 0x238   : > { %v408_v56 = vpop.permute.xlu1 %407 }
 0x239   : > { %v426_v57 = vpop.permute.xlu0 %425  ;;  %v424_v33 = vadd.f32 %v408_v56, %v384_v47 }
 0x23a   : > { %v449_v59 = vadd.f32 %v426_v57, %v417_v55 }
 0x23c   : > { %v457_v62 = vmul.f32 0.0625, %v449_v59  ;;  %v428_v8 = vpop.permute.xlu1 %427 }
 0x23d   : > { %v430_v9 = vpop.permute.xlu0 %429  ;;  %v450_v13 = vadd.f32 %v428_v8, %v418_v60 }
 0x23e   : > { %v473_v12 = vadd.f32 %v465_v58, %v457_v62  ;;  %v451_v10 = vadd.f32 %v430_v9, %v419_v61 }
 0x23f   : > { %v458_v0 = vmul.f32 0.0625, %v450_v13 }
 0x240   : > { %482 = vst.msk [vmem:[%s1003_s29] sm:$0xff] %vm481_vm7, %v473_v12  ;;  %v459_v1 = vmul.f32 0.0625, %v451_v10  ;;  %v432_v2 = vpop.permute.xlu1 %431 }
 0x241   : > { %v434_v18 = vpop.permute.xlu0 %433  ;;  %v474_v19 = vadd.f32 %v466_v11, %v458_v0  ;;  %v452_v21 = vadd.f32 %v432_v2, %v420_v15 }
 0x242   : > { %v475_v20 = vadd.f32 %v467_v63, %v459_v1  ;;  %v453_v22 = vadd.f32 %v434_v18, %v421_v16 }
 0x243   : > { %483 = vst.msk [vmem:[%s1003_s29 + $0x8] sm:$0xff] %vm481_vm7, %v474_v19  ;;  %v460_v25 = vmul.f32 0.0625, %v452_v21 }
 0x244   : > { %484 = vst.msk [vmem:[%s1003_s29 + $0x10] sm:$0xff] %vm481_vm7, %v475_v20  ;;  %v461_v26 = vmul.f32 0.0625, %v453_v22  ;;  %v436_v27 = vpop.permute.xlu1 %435 }
 0x245   : > { %v438_v28 = vpop.permute.xlu0 %437  ;;  %v476_v29 = vadd.f32 %v468_v14, %v460_v25  ;;  %v454_v31 = vadd.f32 %v436_v27, %v422_v23 }
 0x246   : > { %v477_v30 = vadd.f32 %v469_v17, %v461_v26  ;;  %v455_v32 = vadd.f32 %v438_v28, %v423_v24 }
 0x247   : > { %485 = vst.msk [vmem:[%s1003_s29 + $0x18] sm:$0xff] %vm481_vm7, %v476_v29  ;;  %v462_v34 = vmul.f32 0.0625, %v454_v31 }
 0x248   : > { %486 = vst.msk [vmem:[%s1003_s29 + $0x20] sm:$0xff] %vm481_vm7, %v477_v30  ;;  %v463_v5 = vmul.f32 0.0625, %v455_v32  ;;  %v440_v7 = vpop.permute.xlu1 %439 }
 0x249   : > { %v478_v36 = vadd.f32 %v470_v3, %v462_v34  ;;  %v456_v38 = vadd.f32 %v440_v7, %v424_v33 }
 0x24a   : > { %v479_v37 = vadd.f32 %v471_v4, %v463_v5 }
 0x24b   : > { %487 = vst.msk [vmem:[%s1003_s29 + $0x28] sm:$0xff] %vm481_vm7, %v478_v36  ;;  %v464_v39 = vmul.f32 0.0625, %v456_v38 }
 0x24c   : > { %488 = vst.msk [vmem:[%s1003_s29 + $0x30] sm:$0xff] %vm481_vm7, %v479_v37 }
 0x24d   : > { %v480_v6 = vadd.f32 %v472_v35, %v464_v39 }
 0x24f   : > { %489 = vst.msk [vmem:[%s1003_s29 + $0x38] sm:$0xff] %vm481_vm7, %v480_v6 }
 0x250   : > { %695 = shalt.err (!%p692_p2)
}
 0x251   : > { %s696_s21 = scalar_lea.hbm %s1029_s11, 1024  ;;  %s700_s26 = scalar_lea.hbm %s1078_s1, 2048 }
 0x252   : > { %p697_p4 = scmp.ne.s32.totalorder %s1029_s11, %s696_s21  ;;  %p701_p9 = scmp.lt.u32.totalorder %s1029_s11, %s1078_s1 }
 0x253   : > { %p702_p1 = scmp.lt.u32.totalorder %s700_s26, %s696_s21  ;;  %p704_p6 = scmp.lt.u32.totalorder %s696_s21, %s1029_s11 }
 0x254   : > { %p698_p5 = pnand %p697_p4, %p1085_p11 }
 0x255   : > { %p703_p3 = por %p702_p1, %p701_p9 }
 0x256   : > { %p699_p7 = pneg %p698_p5 }
 0x257   : > { %p705_p12 = por %p704_p6, %p703_p3 }
 0x259   : > { %p706_p13 = pnand %p705_p12, %p699_p7 }
 0x25b   : > { %709 = shalt.err (!%p706_p13)
}
 0x25c   : > { %s758_s17 = smov 128   ;;  %s759_s27 = smov 8  }
 0x25d   : > { %600 = dma.vmem_to_hbm [thread:$0]  (%p1085_p11), %s1031_s3, 1024, %s1029_s11, %s491_s10, %s758_s17, %s758_s17, %s759_s27  }
 0x25e PF: > { %s520_s28 = sand.u32 1, %s736_s6   ;;  %p1086_p8 = scmp.ne.s32.totalorder %s1083_s19, 0 }
 0x25f   : > { %p1087_p10 = scmp.ge.s32.totalorder %s748_s9, 2  ;;  %s521_s29 = scalar_lea.sflag [#allocation5], %s520_s28 }
 0x261   : > { %p607_p0 = pnand %p1087_p10, %p1086_p8 }
 0x263   : > { %731 = dma.done.wait (!%p607_p0), %s521_s29, 1024  }
 0x264   : > { %733 = vsyncadd (!%p607_p0), %s521_s29, 4294966272  ;;  %p14_p2 = scmp.ge.s32.totalorder %s795_s12, 4   ;;  %s1088_s6 = smov %s740_s7 }
 0x265   : > { %s1089_s7 = smov %s744_s8  ;;  %s1090_s8 = smov %s807_s15 }
 0x266   : > { %s1091_s9 = smov %s795_s12  ;;  %16 = sbr.rel (!%p14_p2) target bundleno = 5 (0x5), region = 69 }
 0x26d   :  { %526 = vsyncpa [#allocation4], 1 }
 0x26e   :  { %528 = vsyncpa [#allocation4 + $0x1], 1 }
 0x26f   :  { %529 = vsyncpa [#allocation5], 1 }
 0x270   :  { %531 = vsyncpa [#allocation5 + $0x1], 1 }

</bundles_post_ra>
